<compile_context>
chip_gen: v5e
topology: v5e:2x2
jax: 0.10.0
libtpu: 0.0.40
codegen_flags: <defaults>
</compile_context>

<pallas_src>
import math
import functools

import numpy as np
import jax
import jax.numpy as jnp
from jax import lax
from jax.experimental import pallas as pl
from jax.experimental.pallas import tpu as pltpu


def _round_up(x, m):
    return (x + m - 1) // m * m


# x[M, K] . w[N, K] -> [M, N]  (weight kept in native PyTorch layout, contracted on K)
_CONTRACT_LAST = (((1,), (1,)), ((), ()))


def _epilogue(acc_f32, bias_row, w_scale, b_scale, act, out_dtype):
    r = acc_f32 * np.float32(w_scale) + bias_row * np.float32(b_scale)
    if act:
        # sqrt(2) gain is already folded into w_scale / b_scale, only the slope select remains
        r = jnp.where(r >= 0.0, r, r * np.float32(0.2))
    return r.astype(out_dtype)


# ---------------------------------------------------------------------------
# Kernels
# ---------------------------------------------------------------------------
def _linear_kernel_single(x_ref, w_ref, b_ref, o_ref, *,
                          w_scale, b_scale, act, compute_dtype):
    # Single K tile (the common EqualLinear case): no scratch, write straight to o_ref.
    a = x_ref[...].astype(compute_dtype)            # in-kernel cast (no wrapper HBM pass)
    w = w_ref[...].astype(compute_dtype)
    acc = lax.dot_general(a, w, dimension_numbers=_CONTRACT_LAST,
                          preferred_element_type=jnp.float32)
    o_ref[...] = _epilogue(acc, b_ref[...], w_scale, b_scale, act, o_ref.dtype)


def _linear_kernel_multi(x_ref, w_ref, b_ref, o_ref, acc_ref, *,
                         w_scale, b_scale, act, compute_dtype, nk):
    k = pl.program_id(2)

    @pl.when(k == 0)
    def _():
        acc_ref[...] = jnp.zeros_like(acc_ref)

    a = x_ref[...].astype(compute_dtype)
    w = w_ref[...].astype(compute_dtype)
    acc_ref[...] += lax.dot_general(a, w, dimension_numbers=_CONTRACT_LAST,
                                    preferred_element_type=jnp.float32)

    @pl.when(k == nk - 1)
    def _():
        o_ref[...] = _epilogue(acc_ref[...], b_ref[...], w_scale, b_scale, act,
                               o_ref.dtype)


# ---------------------------------------------------------------------------
# Wrapper: per-call tiles, padding only where unavoidable, pallas_call launch
# ---------------------------------------------------------------------------
def _linear_bias_act(x2d, weight, bias, *, w_scale, b_scale, act,
                     out_dtype, compute_dtype):
    """out = act(x2d @ weight.T * w_scale + bias * b_scale)

    x2d    : [M, K]   activations (any float dtype; cast to compute_dtype in-kernel)
    weight : [N, K]   native PyTorch layout (NOT transposed, NOT pre-cast)
    bias   : [N] or None
    """
    M, K = x2d.shape
    N, K2 = weight.shape
    assert K == K2

    # --- M tiles: single block when small, else largest power-of-two tile dividing Mp ---
    Mp = _round_up(M, 8)
    if Mp <= 512:
        TM = Mp
    else:
        TM = next(c for c in (512, 256, 128, 64, 32, 16, 8) if Mp % c == 0)

    # --- K tiles: keep typical EqualLinear K (<= 2048) in ONE tile -> scratch-free path ---
    Kp = _round_up(K, 128)
    if Kp <= 2048:
        TK = Kp
    else:
        TK = next(c for c in (2048, 1024, 512, 256, 128) if Kp % c == 0)
    nk = Kp // TK

    # --- N tiles (output lanes): 256-wide only when >= 2 blocks remain (megacore/MXU) ---
    Np = _round_up(N, 128)
    TN = 256 if (Np >= 512 and Np % 256 == 0) else 128

    # --- pad only when actually unaligned (zero-fill keeps the K contraction exact) ---
    x_in = x2d if (Mp, Kp) == (M, K) else jnp.pad(x2d, ((0, Mp - M), (0, Kp - K)))
    w_in = weight if (Np, Kp) == (N, K) else jnp.pad(weight, ((0, Np - N), (0, Kp - K)))
    if bias is None:
        b_in = jnp.zeros((1, Np), jnp.float32)
    else:
        b_in = bias.astype(jnp.float32)
        if Np != N:
            b_in = jnp.pad(b_in, (0, Np - N))
        b_in = b_in.reshape(1, Np)

    cost = pl.CostEstimate(
        flops=2 * M * K * N,
        transcendentals=0,
        bytes_accessed=(x2d.size * x2d.dtype.itemsize
                        + weight.size * weight.dtype.itemsize
                        + N * 4
                        + M * N * np.dtype(out_dtype).itemsize),
    )
    cparams = pltpu.CompilerParams(
        dimension_semantics=("parallel", "parallel")
        + (("arbitrary",) if nk > 1 else ()),
        # above v5e's 16 MiB scoped default, safely inside v7x's 64 MiB VMEM
        vmem_limit_bytes=32 * 1024 * 1024,
    )

    if nk == 1:
        out = pl.pallas_call(
            functools.partial(_linear_kernel_single, w_scale=w_scale,
                              b_scale=b_scale, act=act,
                              compute_dtype=compute_dtype),
            out_shape=jax.ShapeDtypeStruct((Mp, Np), out_dtype),
            grid_spec=pltpu.PrefetchScalarGridSpec(
                num_scalar_prefetch=0,
                grid=(Mp // TM, Np // TN),
                in_specs=[
                    pl.BlockSpec((TM, TK), lambda i, j: (i, 0)),
                    pl.BlockSpec((TN, TK), lambda i, j: (j, 0)),   # native [N, K] weight
                    pl.BlockSpec((1, TN), lambda i, j: (0, j)),
                ],
                out_specs=pl.BlockSpec((TM, TN), lambda i, j: (i, j)),
            ),
            compiler_params=cparams,
            cost_estimate=cost,
        )(x_in, w_in, b_in)
    else:
        out = pl.pallas_call(
            functools.partial(_linear_kernel_multi, w_scale=w_scale,
                              b_scale=b_scale, act=act,
                              compute_dtype=compute_dtype, nk=nk),
            out_shape=jax.ShapeDtypeStruct((Mp, Np), out_dtype),
            grid_spec=pltpu.PrefetchScalarGridSpec(
                num_scalar_prefetch=0,
                grid=(Mp // TM, Np // TN, nk),
                in_specs=[
                    pl.BlockSpec((TM, TK), lambda i, j, k: (i, k)),
                    pl.BlockSpec((TN, TK), lambda i, j, k: (j, k)),
                    pl.BlockSpec((1, TN), lambda i, j, k: (0, j)),
                ],
                out_specs=pl.BlockSpec((TM, TN), lambda i, j, k: (i, j)),
                scratch_shapes=[pltpu.VMEM((TM, TN), jnp.float32)],
            ),
            compiler_params=cparams,
            cost_estimate=cost,
        )(x_in, w_in, b_in)

    if (Mp, Np) != (M, N):
        # Padded rows/cols contain bias/act garbage by construction; slice them off.
        # TODO(synk): replace with an in-kernel masked epilogue store for large ragged M.
        out = out[:M, :N]
    return out


# ---------------------------------------------------------------------------
# EqualLinear forward (PyTorch weight layout: [out_dim, in_dim], no transpose needed)
# ---------------------------------------------------------------------------
def equal_linear(x, weight, bias=None, *, lr_mul=1.0, activation=None,
                 out_dtype=jnp.float32, compute_dtype=jnp.bfloat16):
    out_dim, in_dim = weight.shape
    w_scale = 1.0 / math.sqrt(in_dim) * lr_mul
    b_scale = lr_mul
    act = bool(activation)
    if act:
        # fused_leaky_relu: sqrt(2)*leaky_relu(y + b) == leaky_relu(sqrt(2)*y + sqrt(2)*b)
        w_scale *= 2.0 ** 0.5
        b_scale *= 2.0 ** 0.5
    lead = x.shape[:-1]
    x2d = x.reshape(-1, in_dim)
    out = _linear_bias_act(x2d, weight, bias,
                           w_scale=w_scale, b_scale=b_scale, act=act,
                           out_dtype=out_dtype, compute_dtype=compute_dtype)
    return out.reshape(*lead, out_dim)


# ---------------------------------------------------------------------------
if __name__ == "__main__":
    key = jax.random.PRNGKey(0)
    k1, k2, kx = jax.random.split(key, 3)

    batch, in_dim, hidden, out_dim = 8, 512, 256, 128
    lr_mul1 = 0.5

    # PyTorch init: weight = randn(out, in) / lr_mul ; bias = full(bias_init)
    w1 = jax.random.normal(k1, (hidden, in_dim), jnp.float32) / lr_mul1
    b1 = jnp.full((hidden,), 0.2, jnp.float32)
    w2 = jax.random.normal(k2, (out_dim, hidden), jnp.float32)
    b2 = jnp.zeros((out_dim,), jnp.float32)
    x = jax.random.normal(kx, (batch, in_dim), jnp.float32)

    @jax.jit
    def fwd(xx):
        # layer 1: fused_leaky_relu path, emits bf16 so layer 2 needs no input-cast pass
        h = equal_linear(xx, w1, b1, lr_mul=lr_mul1, activation="fused_lrelu",
                         out_dtype=jnp.bfloat16)
        # layer 2: plain linear, f32 output
        return equal_linear(h, w2, b2, lr_mul=1.0, activation=None,
                            out_dtype=jnp.float32)

    out = jax.block_until_ready(fwd(x))

    # pure-JAX f32 reference of the PyTorch forward
    def ref_equal_linear(xx, w, b, lr_mul, activation):
        scale = 1.0 / math.sqrt(w.shape[1]) * lr_mul
        y = xx @ (w * scale).T
        if activation:
            z = y + b * lr_mul
            return jnp.where(z >= 0, z, z * 0.2) * (2.0 ** 0.5)
        return y + b * lr_mul

    h_ref = ref_equal_linear(x, w1, b1, lr_mul1, True)
    ref = ref_equal_linear(h_ref, w2, b2, 1.0, False)

    assert out.shape == (batch, out_dim), out.shape
    assert bool(jnp.all(jnp.isfinite(out)))
    # bf16 MXU operands + bf16 intermediate, f32 accumulation => loose tolerance vs f32 ref
    np.testing.assert_allclose(np.asarray(out), np.asarray(ref), rtol=5e-2, atol=5e-2)
    print("KERNEL_OK")
</pallas_src>

<mosaic_0001>
module attributes {stable_mosaic.version = 11 : i64} {
  func.func @_linear_kernel_single(%arg0: i32, %arg1: i32, %arg2: memref<8x512xf32, #tpu.memory_space<vmem>>, %arg3: memref<128x512xf32, #tpu.memory_space<vmem>>, %arg4: memref<1x128xf32, #tpu.memory_space<vmem>>, %arg5: memref<8x128xbf16, #tpu.memory_space<vmem>>) attributes {dimension_semantics = [#tpu.dimension_semantics<parallel>, #tpu.dimension_semantics<parallel>], iteration_bounds = array<i64: 1, 2>, scalar_prefetch = 0 : i64, scratch_operands = 0 : i64, tpu.core_type = #tpu.core_type<tc>, window_params = [{transform_indices = @transform_0, window_bounds = array<i64: 8, 512>}, {transform_indices = @transform_1, window_bounds = array<i64: 128, 512>}, {transform_indices = @transform_2, window_bounds = array<i64: 1, 128>}, {transform_indices = @transform_3, window_bounds = array<i64: 8, 128>}]} {
    %c0 = arith.constant 0 : index
    %c0_0 = arith.constant 0 : index
    %0 = vector.load %arg2[%c0, %c0_0] : memref<8x512xf32, #tpu.memory_space<vmem>>, vector<8x512xf32>
    %1 = arith.truncf %0 : vector<8x512xf32> to vector<8x512xbf16>
    %c0_1 = arith.constant 0 : index
    %c0_2 = arith.constant 0 : index
    %2 = vector.load %arg3[%c0_1, %c0_2] : memref<128x512xf32, #tpu.memory_space<vmem>>, vector<128x512xf32>
    %3 = arith.truncf %2 : vector<128x512xf32> to vector<128x512xbf16>
    %cst = arith.constant dense<0.000000e+00> : vector<8x128xf32>
    %4 = tpu.matmul %1, %3, %cst {dimension_numbers = #tpu.dot_dimension_numbers<[1], [1], [0], [0], [0, 0, 1, 0], [], []>} : vector<8x512xbf16>, vector<128x512xbf16>, vector<8x128xf32> -> vector<8x128xf32>
    %c0_3 = arith.constant 0 : index
    %c0_4 = arith.constant 0 : index
    %5 = vector.load %arg4[%c0_3, %c0_4] : memref<1x128xf32, #tpu.memory_space<vmem>>, vector<1x128xf32>
    %cst_5 = arith.constant 3.125000e-02 : f32
    %6 = vector.broadcast %cst_5 : f32 to vector<8x128xf32>
    %7 = arith.mulf %4, %6 : vector<8x128xf32>
    %cst_6 = arith.constant 0.707106769 : f32
    %8 = vector.broadcast %cst_6 : f32 to vector<1x128xf32>
    %9 = arith.mulf %5, %8 : vector<1x128xf32>
    %10 = vector.broadcast %9 : vector<1x128xf32> to vector<8x128xf32>
    %11 = arith.addf %7, %10 : vector<8x128xf32>
    %cst_7 = arith.constant 0.000000e+00 : f32
    %12 = vector.broadcast %cst_7 : f32 to vector<8x128xf32>
    %13 = arith.cmpf oge, %11, %12 : vector<8x128xf32>
    %cst_8 = arith.constant 2.000000e-01 : f32
    %14 = vector.broadcast %cst_8 : f32 to vector<8x128xf32>
    %15 = arith.mulf %11, %14 : vector<8x128xf32>
    %16 = arith.select %13, %11, %15 : vector<8x128xi1>, vector<8x128xf32>
    %17 = arith.truncf %16 : vector<8x128xf32> to vector<8x128xbf16>
    %c0_9 = arith.constant 0 : index
    %c0_10 = arith.constant 0 : index
    %18 = vector.load %arg5[%c0_9, %c0_10] : memref<8x128xbf16, #tpu.memory_space<vmem>>, vector<8x128xbf16>
    tpu.vector_store %arg5[%c0_9, %c0_10], %17 {strides = array<i32>} : memref<8x128xbf16, #tpu.memory_space<vmem>>, vector<8x128xbf16>,
    return
  }
  func.func @transform_0(%arg0: i32, %arg1: i32) -> (i32, i32) {
    %c0_i32 = arith.constant 0 : i32
    %c0_i32_0 = arith.constant 0 : i32
    return %arg0, %c0_i32 : i32, i32
  }
  func.func @transform_1(%arg0: i32, %arg1: i32) -> (i32, i32) {
    %c0_i32 = arith.constant 0 : i32
    %c0_i32_0 = arith.constant 0 : i32
    return %arg1, %c0_i32 : i32, i32
  }
  func.func @transform_2(%arg0: i32, %arg1: i32) -> (i32, i32) {
    %c0_i32 = arith.constant 0 : i32
    %c0_i32_0 = arith.constant 0 : i32
    return %c0_i32, %arg1 : i32, i32
  }
  func.func @transform_3(%arg0: i32, %arg1: i32) -> (i32, i32) {
    %c0_i32 = arith.constant 0 : i32
    return %arg0, %arg1 : i32, i32
  }
}

module attributes {stable_mosaic.version = 11 : i64} {
  func.func @_linear_kernel_single(%arg0: i32, %arg1: i32, %arg2: memref<8x256xbf16, #tpu.memory_space<vmem>>, %arg3: memref<128x256xf32, #tpu.memory_space<vmem>>, %arg4: memref<1x128xf32, #tpu.memory_space<vmem>>, %arg5: memref<8x128xf32, #tpu.memory_space<vmem>>) attributes {dimension_semantics = [#tpu.dimension_semantics<parallel>, #tpu.dimension_semantics<parallel>], iteration_bounds = array<i64: 1, 1>, scalar_prefetch = 0 : i64, scratch_operands = 0 : i64, tpu.core_type = #tpu.core_type<tc>, window_params = [{transform_indices = @transform_0, window_bounds = array<i64: 8, 256>}, {transform_indices = @transform_1, window_bounds = array<i64: 128, 256>}, {transform_indices = @transform_2, window_bounds = array<i64: 1, 128>}, {transform_indices = @transform_3, window_bounds = array<i64: 8, 128>}]} {
    %c0 = arith.constant 0 : index
    %c0_0 = arith.constant 0 : index
    %0 = vector.load %arg2[%c0, %c0_0] : memref<8x256xbf16, #tpu.memory_space<vmem>>, vector<8x256xbf16>
    %c0_1 = arith.constant 0 : index
    %c0_2 = arith.constant 0 : index
    %1 = vector.load %arg3[%c0_1, %c0_2] : memref<128x256xf32, #tpu.memory_space<vmem>>, vector<128x256xf32>
    %2 = arith.truncf %1 : vector<128x256xf32> to vector<128x256xbf16>
    %cst = arith.constant dense<0.000000e+00> : vector<8x128xf32>
    %3 = tpu.matmul %0, %2, %cst {dimension_numbers = #tpu.dot_dimension_numbers<[1], [1], [0], [0], [0, 0, 1, 0], [], []>} : vector<8x256xbf16>, vector<128x256xbf16>, vector<8x128xf32> -> vector<8x128xf32>
    %c0_3 = arith.constant 0 : index
    %c0_4 = arith.constant 0 : index
    %4 = vector.load %arg4[%c0_3, %c0_4] : memref<1x128xf32, #tpu.memory_space<vmem>>, vector<1x128xf32>
    %cst_5 = arith.constant 6.250000e-02 : f32
    %5 = vector.broadcast %cst_5 : f32 to vector<8x128xf32>
    %6 = arith.mulf %3, %5 : vector<8x128xf32>
    %cst_6 = arith.constant 1.000000e+00 : f32
    %7 = vector.broadcast %cst_6 : f32 to vector<1x128xf32>
    %8 = arith.mulf %4, %7 : vector<1x128xf32>
    %9 = vector.broadcast %8 : vector<1x128xf32> to vector<8x128xf32>
    %10 = arith.addf %6, %9 : vector<8x128xf32>
    %c0_7 = arith.constant 0 : index
    %c0_8 = arith.constant 0 : index
    %11 = vector.load %arg5[%c0_7, %c0_8] : memref<8x128xf32, #tpu.memory_space<vmem>>, vector<8x128xf32>
    tpu.vector_store %arg5[%c0_7, %c0_8], %10 {strides = array<i32>} : memref<8x128xf32, #tpu.memory_space<vmem>>, vector<8x128xf32>,
    return
  }
  func.func @transform_0(%arg0: i32, %arg1: i32) -> (i32, i32) {
    %c0_i32 = arith.constant 0 : i32
    %c0_i32_0 = arith.constant 0 : i32
    return %arg0, %c0_i32 : i32, i32
  }
  func.func @transform_1(%arg0: i32, %arg1: i32) -> (i32, i32) {
    %c0_i32 = arith.constant 0 : i32
    %c0_i32_0 = arith.constant 0 : i32
    return %arg1, %c0_i32 : i32, i32
  }
  func.func @transform_2(%arg0: i32, %arg1: i32) -> (i32, i32) {
    %c0_i32 = arith.constant 0 : i32
    %c0_i32_0 = arith.constant 0 : i32
    return %c0_i32, %arg1 : i32, i32
  }
  func.func @transform_3(%arg0: i32, %arg1: i32) -> (i32, i32) {
    %c0_i32 = arith.constant 0 : i32
    return %arg0, %arg1 : i32, i32
  }
}

</mosaic_0001>

<bundles_post_ra>
// kernel: fwd.3
= control target key start
LH: loop header
LB: loop body
LE: loop exit
PB: predicated region body
PF: predicated region fallthrough
CT: control target
= control target key end

     0   :  { %s274_s0 = inlined_call_operand.vmem [shape: bf16[8,256], index: 0, kind: input, shape index: {}]   ;;  %s275_s1 = inlined_call_operand.vmem [shape: f32[128,256], index: 1, kind: input, shape index: {}]   ;;  %s276_s2 = inlined_call_operand.vmem [shape: f32[1,128], index: 2, kind: input, shape index: {}]   ;;  %s277_s3 = inlined_call_operand.hbm [shape: f32[8,128], index: 3, kind: output, shape index: {}]  }
   0x1   :  { %v44_v0 = vld [vmem:[%s275_s1 + $0xe0] sm:$0xff]  ;;  %v46_v1 = vld [vmem:[%s275_s1 + $0xf0] sm:$0xff]  ;;  %v45_v2 = vld [vmem:[%s275_s1 + $0xe8] sm:$0xff] }
   0x2   :  { %v62_v3 = vpack.c.bf16 %v46_v1, %v44_v0  ;;  %v47_v4 = vld [vmem:[%s275_s1 + $0xf8] sm:$0xff]  ;;  %v40_v6 = vld [vmem:[%s275_s1 + $0xc0] sm:$0xff]  ;;  %v42_v7 = vld [vmem:[%s275_s1 + $0xd0] sm:$0xff] }
   0x3   :  { %v63_v5 = vpack.c.bf16 %v47_v4, %v45_v2  ;;  %v41_v8 = vld [vmem:[%s275_s1 + $0xc8] sm:$0xff]  ;;  %v43_v9 = vld [vmem:[%s275_s1 + $0xd8] sm:$0xff]  ;;  %v60_v10 = vpack.c.bf16 %v42_v7, %v40_v6 }
   0x4   :  { %71 = vmatpush.bf16.xpose.msra.mxu0 %v62_v3 }
   0x5   :  { %84 = vmatpush.bf16.xpose.msra.mxu1 %v63_v5 }
   0x6   :  { %8 = vsyncpa [#allocation3], 0  ;;  %v61_v11 = vpack.c.bf16 %v43_v9, %v41_v8  ;;  %v36_v12 = vld [vmem:[%s275_s1 + $0xa0] sm:$0xff]  ;;  %v38_v13 = vld [vmem:[%s275_s1 + $0xb0] sm:$0xff]  ;;  %s111_s28 = sshll.u32 %s277_s3, 4  ;;  %s112_s28 = int_to_ptr.hbm [resolvable:$true] %s111_s28 }
   0x7   :  { %v37_v14 = vld [vmem:[%s275_s1 + $0xa8] sm:$0xff]  ;;  %v39_v15 = vld [vmem:[%s275_s1 + $0xb8] sm:$0xff]  ;;  %v58_v16 = vpack.c.bf16 %v38_v13, %v36_v12  ;;  %v32_v18 = vld [vmem:[%s275_s1 + $0x80] sm:$0xff] }
   0x8   :  { %v59_v17 = vpack.c.bf16 %v39_v15, %v37_v14  ;;  %v34_v19 = vld [vmem:[%s275_s1 + $0x90] sm:$0xff]  ;;  %v33_v20 = vld [vmem:[%s275_s1 + $0x88] sm:$0xff]  ;;  %v35_v21 = vld [vmem:[%s275_s1 + $0x98] sm:$0xff] }
   0x9   :  { %v56_v22 = vpack.c.bf16 %v34_v19, %v32_v18  ;;  %v57_v23 = vpack.c.bf16 %v35_v21, %v33_v20  ;;  %v28_v24 = vld [vmem:[%s275_s1 + $0x60] sm:$0xff]  ;;  %v30_v25 = vld [vmem:[%s275_s1 + $0x70] sm:$0xff]  ;;  %v29_v26 = vld [vmem:[%s275_s1 + $0x68] sm:$0xff] }
   0xa   :  { %v31_v27 = vld [vmem:[%s275_s1 + $0x78] sm:$0xff]  ;;  %v54_v28 = vpack.c.bf16 %v30_v25, %v28_v24  ;;  %v24_v30 = vld [vmem:[%s275_s1 + $0x40] sm:$0xff]  ;;  %v26_v31 = vld [vmem:[%s275_s1 + $0x50] sm:$0xff] }
   0xb   :  { %v55_v29 = vpack.c.bf16 %v31_v27, %v29_v26  ;;  %v25_v32 = vld [vmem:[%s275_s1 + $0x48] sm:$0xff]  ;;  %v27_v33 = vld [vmem:[%s275_s1 + $0x58] sm:$0xff]  ;;  %v52_v34 = vpack.c.bf16 %v26_v31, %v24_v30  ;;  %v20_v36 = vld [vmem:[%s275_s1 + $0x20] sm:$0xff] }
   0xc   :  { %72 = vmatpush.bf16.xpose.msra.mxu0 %v60_v10  ;;  %v53_v35 = vpack.c.bf16 %v27_v33, %v25_v32  ;;  %v22_v37 = vld [vmem:[%s275_s1 + $0x30] sm:$0xff]  ;;  %v21_v38 = vld [vmem:[%s275_s1 + $0x28] sm:$0xff]  ;;  %v23_v39 = vld [vmem:[%s275_s1 + $0x38] sm:$0xff] }
   0xd   :  { %85 = vmatpush.bf16.xpose.msra.mxu1 %v61_v11  ;;  %v50_v40 = vpack.c.bf16 %v22_v37, %v20_v36  ;;  %v51_v41 = vpack.c.bf16 %v23_v39, %v21_v38  ;;  %v16_v42 = vld [vmem:[%s275_s1] sm:$0xff]  ;;  %v18_v43 = vld [vmem:[%s275_s1 + $0x10] sm:$0xff]  ;;  %v17_v44 = vld [vmem:[%s275_s1 + $0x8] sm:$0xff] }
   0xe   :  { %v19_v45 = vld [vmem:[%s275_s1 + $0x18] sm:$0xff]  ;;  %v48_v46 = vpack.c.bf16 %v18_v43, %v16_v42  ;;  %v15_v47 = vld [vmem:[%s274_s0] sm:$0xff]  ;;  %s148_s1 = smov [#allocation2]  }
   0xf   :  { %v49_v48 = vpack.c.bf16 %v19_v45, %v17_v44  ;;  %v65_v49 = vunpack.c.l.b16 %v15_v47  ;;  %v66_v50 = vunpack.c.h.b16 %v15_v47  ;;  %v121_v56 = vld [vmem:[%s276_s2] ss:$0 sm:$0xff]  ;;  %s109_s26 = sshll.u32 %s148_s1, 4  ;;  %s110_s26 = int_to_ptr.vmem [resolvable:$true] %s109_s26 }
  0x11   :  { %v67_v51 = vpack.c.b16 %v65_v49, %v65_v49  ;;  %v68_v52 = vpack.c.b16 %v66_v50, %v66_v50 }
  0x14   :  { %73 = vmatpush.bf16.xpose.msra.mxu0 %v58_v16 }
  0x15   :  { %86 = vmatpush.bf16.xpose.msra.mxu1 %v59_v17 }
  0x1c   :  { %74 = vmatpush.bf16.xpose.msra.mxu0 %v56_v22 }
  0x1d   :  { %87 = vmatpush.bf16.xpose.msra.mxu1 %v57_v23 }
  0x24   :  { %75 = vmatpush.bf16.xpose.msra.mxu0 %v54_v28 }
  0x25   :  { %88 = vmatpush.bf16.xpose.msra.mxu1 %v55_v29 }
  0x2c   :  { %76 = vmatpush.bf16.xpose.msra.mxu0 %v52_v34 }
  0x2d   :  { %89 = vmatpush.bf16.xpose.msra.mxu1 %v53_v35 }
  0x34   :  { %77 = vmatpush.bf16.xpose.msra.mxu0 %v50_v40 }
  0x35   :  { %90 = vmatpush.bf16.xpose.msra.mxu1 %v51_v41 }
  0x3c   :  { %78 = vmatpush.bf16.xpose.msra.mxu0 %v48_v46 }
  0x3d   :  { %91 = vmatpush.bf16.xpose.msra.mxu1 %v49_v48 }
  0x43   :  { %79 = vmatmul.bf16.vlgmr.msra.gmra.mxu0 %v67_v51 }
  0x44   :  { %92 = vmatmul.bf16.vlgmr.msra.gmra.mxu1 %v68_v52 }
  0xc0   :  { %v80_v53 = vpop.f32.mrf.mxu0 }
  0xc1   :  { %v93_v54 = vpop.f32.mrf.mxu1 }
  0xc2   :  { %v94_v55 = vadd.f32 %v93_v54, %v80_v53 }
  0xc4   :  { %v98_v57 = vmul.f32 0.0625, %v94_v55 }
  0xc6   :  { %v102_v58 = vadd.f32 %v121_v56, %v98_v57 }
  0xc8   :  { %103 = vst [vmem:[#allocation2] sm:$0xff] %v102_v58  ;;  %v82_v59 = vpop.f32.mrf.mxu0 }
  0xc9   :  { %v95_v60 = vpop.f32.mrf.mxu1  ;;  %114 = dma.vmem_to_hbm [thread:$0]  %s110_s26, 128, %s112_s28, [#allocation3]  }
  0xca   :  { %146 = dma.done.wait [#allocation3], 128  }
  0xcb   :  { %147 = vsyncadd [#allocation3], 4294967168 }
  0xcc   :  { %119 = vsyncpa [#allocation3], 1 }

// kernel: fwd.2
= control target key start
LH: loop header
LB: loop body
LE: loop exit
PB: predicated region body
PF: predicated region fallthrough
CT: control target
= control target key end

     0   :  { %8 = vsyncpa [#allocation3], 0  ;;  %s944_s0 = inlined_call_operand.hbm [shape: f32[8,512], index: 0, kind: input, shape index: {}]   ;;  %s945_s1 = inlined_call_operand.hbm [shape: f32[256,512], index: 1, kind: input, shape index: {}]   ;;  %s946_s2 = inlined_call_operand.vmem [shape: f32[1,256], index: 2, kind: input, shape index: {}]   ;;  %s947_s3 = inlined_call_operand.vmem [shape: bf16[8,256], index: 3, kind: output, shape index: {}]  }
   0x1   :  { %9 = vsyncpa [#allocation5], 0 }
   0x2   :  { %11 = vsyncpa [#allocation5 + $0x1], 0  ;;  %s756_s12 = smov 0   ;;  %s758_s13 = smov 0  }
   0x3   :  { %s760_s14 = smov 0   ;;  %s762_s15 = smov 0  }
   0x4   :  { %s764_s16 = smov 0   ;;  %s766_s17 = smov 0  }
   0x5 LB: > { %s532_s18 = sadd.s32 4294967295, %s731_s17   ;;  %s62_s19 = sadd.s32 1, %s719_s14  ;;  %s731_s17 = sphi %s766_s17, %s17_s17   ;;  %s727_s16 = sphi %s764_s16, %s957_s16   ;;  %s723_s15 = sphi %s762_s15, %s956_s15   ;;  %s719_s14 = sphi %s760_s14, %s955_s14   ;;  %s715_s13 = sphi %s758_s13, %s954_s13   ;;  %s711_s12 = sphi %s756_s12, %s953_s12  }
   0x6   : > { %p69_p0 = scmp.ne.s32.totalorder %s719_s14, %s715_s13  ;;  %p70_p1 = scmp.eq.s32.totalorder %s731_s17, 0 }
   0x7   : > { %p75_p2 = scmp.ne.s32.totalorder %s715_s13, %s711_s12  ;;  %p790_p3 = scmp.eq.s32.totalorder %s532_s18, 0 }
   0x8   : > { %p794_p4 = por %p70_p1, %p69_p0  ;;  %p534_p5 = scmp.ge.s32.totalorder %s731_s17, 1 }
   0x9   : > { %p801_p6 = por %p790_p3, %p75_p2  ;;  %p140_p7 = scmp.lt.s32.totalorder %s731_s17, 3 }
   0xa   : > { %s155_s25 = sshll.u32 %s944_s0, 4  ;;  %s733_s27 = smov [#allocation2]   ;;  %s156_s25 = int_to_ptr.hbm [resolvable:$true] %s155_s25 }
   0xb   : > { %p809_p8 = pnand %p534_p5, %p140_p7  ;;  %s157_s28 = sshll.u32 %s733_s27, 4  ;;  %s158_s28 = int_to_ptr.vmem [resolvable:$true] %s157_s28 }
   0xc   : > { %p564_p10 = scmp.lt.s32.totalorder %s731_s17, 2  ;;  %s26_s30 = sadd.s32 1, %s727_s16 }
   0xd   : > { %p555_p9 = pneg %p809_p8  ;;  %p27_p13 = scmp.ge.s32.totalorder %s26_s30, 2 }
   0xe   : > { %p820_p12 = pnand %p564_p10, %p794_p4  ;;  %s168_s4 = sand.u32 1, %s719_s14  }
   0xf   : > { %p556_p11 = pnand %p555_p9, %p790_p3  ;;  %s548_s5 = sshll.u32 %s727_s16, 9 }
  0x10   : > { %s959_s30 = smov (%p27_p13, %s26_s30), 0  ;;  %s537_s6 = sshll.u32 %s168_s4, 9 }
  0x11   : > { %558 = dma.hbm_to_vmem [thread:$0]  (!%p556_p11), %s156_s25, 512, %s158_s28, [#allocation3]  }
  0x12   : > { %s59_s7 = ssub.s32 %s727_s16, %s959_s30  ;;  %s178_s10 = scalar_lea.hbm %s945_s1, %s548_s5 }
  0x13   : > { %p60_p0 = scmp.eq.s32.totalorder %s59_s7, 0  ;;  %s179_s11 = sshll.u32 %s178_s10, 4  ;;  %s180_s11 = int_to_ptr.hbm [resolvable:$true] %s179_s11 }
  0x14   : > { %s172_s12 = scalar_lea.vmem [#allocation4], %s537_s6  ;;  %s169_s23 = scalar_lea.sflag [#allocation5], %s168_s4 }
  0x15   : > { %s181_s18 = sshll.u32 %s172_s12, 4  ;;  %s734_s24 = smov 512   ;;  %s182_s18 = int_to_ptr.vmem [resolvable:$true] %s181_s18 }
  0x16   : > { %s837_s21 = scalar_select %p60_p0, %s719_s14, %s62_s19  }
  0x17   : > { %s735_s25 = smov 32   ;;  %199 = sbr.rel (%p809_p8) target bundleno = 247 (0xf7), region = 32 }
  0x18   : > { %562 = dma.hbm_to_vmem [thread:$0]  (!%p820_p12), %s180_s11, 8192, %s182_s18, %s169_s23, %s734_s24, %s734_s24, %s735_s25  }
  0x1c   : > { %702 = dma.done.wait (%p790_p3), [#allocation3], 512  }
  0x1d   : > { %704 = vsyncadd (%p790_p3), [#allocation3], 4294966784  ;;  %s206_s19 = sand.u32 1, %s715_s13  }
  0x1e   : > { %s543_s27 = sshll.u32 %s206_s19, 9  ;;  %s207_s28 = scalar_lea.sflag [#allocation5], %s206_s19 }
  0x1f   : > { %s848_s5 = scalar_lea.vmem [#allocation4], %s543_s27 }
  0x20   : > { %706 = dma.done.wait (%p801_p6), %s207_s28, 8192  }
  0x21   : > { %708 = vsyncadd (%p801_p6), %s207_s28, 4294959104  ;;  %v316_v0 = vld [vmem:[%s848_s5 + $0x1c0] sm:$0xff]  ;;  %v317_v2 = vld [vmem:[%s848_s5 + $0x1c8] sm:$0xff]  ;;  %p241_p1 = scmp.lt.s32.totalorder %s723_s15, 1 }
  0x22   : > { %v320_v1 = vld [vmem:[%s848_s5 + $0x1e0] sm:$0xff]  ;;  %v321_v4 = vld [vmem:[%s848_s5 + $0x1e8] sm:$0xff]  ;;  %v318_v5 = vld [vmem:[%s848_s5 + $0x1d0] sm:$0xff] }
  0x23   : > { %v352_v3 = vpack.c.bf16 %v320_v1, %v316_v0  ;;  %v322_v6 = vld [vmem:[%s848_s5 + $0x1f0] sm:$0xff]  ;;  %v353_v7 = vpack.c.bf16 %v321_v4, %v317_v2  ;;  %v319_v9 = vld [vmem:[%s848_s5 + $0x1d8] sm:$0xff]  ;;  %v308_v12 = vld [vmem:[%s848_s5 + $0x180] sm:$0xff]  ;;  %s961_s15 = smov (!%p241_p1, %s723_s15), 1 }
  0x24   : > { %v354_v8 = vpack.c.bf16 %v322_v6, %v318_v5  ;;  %v323_v10 = vld [vmem:[%s848_s5 + $0x1f8] sm:$0xff]  ;;  %v312_v13 = vld [vmem:[%s848_s5 + $0x1a0] sm:$0xff]  ;;  %v309_v14 = vld [vmem:[%s848_s5 + $0x188] sm:$0xff]  ;;  %s243_s26 = scalar_lea.vmem %s946_s2, %s961_s15  ;;  %s544_s29 = sshll.u32 %s961_s15, 2 }
  0x25   : > { %356 = vmatpush.bf16.xpose.msra.mxu0 %v352_v3  ;;  %v355_v11 = vpack.c.bf16 %v323_v10, %v319_v9  ;;  %369 = vmatpush.bf16.xpose.msra.mxu1 %v353_v7  ;;  %v313_v15 = vld [vmem:[%s848_s5 + $0x1a8] sm:$0xff]  ;;  %v310_v16 = vld [vmem:[%s848_s5 + $0x190] sm:$0xff]  ;;  %v311_v18 = vld [vmem:[%s848_s5 + $0x198] sm:$0xff]  ;;  %v348_v20 = vpack.c.bf16 %v312_v13, %v308_v12  ;;  %s251_s7 = scalar_lea.vmem %s947_s3, %s544_s29 }
  0x26   : > { %382 = vmatpush.bf16.xpose.msra.mxu2 %v354_v8  ;;  %v314_v17 = vld [vmem:[%s848_s5 + $0x1b0] sm:$0xff]  ;;  %v315_v19 = vld [vmem:[%s848_s5 + $0x1b8] sm:$0xff]  ;;  %v349_v21 = vpack.c.bf16 %v313_v15, %v309_v14  ;;  %v300_v24 = vld [vmem:[%s848_s5 + $0x140] sm:$0xff] }
  0x27   : > { %395 = vmatpush.bf16.xpose.msra.mxu3 %v355_v11  ;;  %v350_v22 = vpack.c.bf16 %v314_v17, %v310_v16  ;;  %v351_v23 = vpack.c.bf16 %v315_v19, %v311_v18  ;;  %v304_v25 = vld [vmem:[%s848_s5 + $0x160] sm:$0xff]  ;;  %v301_v26 = vld [vmem:[%s848_s5 + $0x148] sm:$0xff]  ;;  %v302_v28 = vld [vmem:[%s848_s5 + $0x150] sm:$0xff] }
  0x28   : > { %v305_v27 = vld [vmem:[%s848_s5 + $0x168] sm:$0xff]  ;;  %v306_v29 = vld [vmem:[%s848_s5 + $0x170] sm:$0xff]  ;;  %v303_v30 = vld [vmem:[%s848_s5 + $0x158] sm:$0xff]  ;;  %v344_v32 = vpack.c.bf16 %v304_v25, %v300_v24 }
  0x29   : > { %v307_v31 = vld [vmem:[%s848_s5 + $0x178] sm:$0xff]  ;;  %v345_v33 = vpack.c.bf16 %v305_v27, %v301_v26  ;;  %v346_v34 = vpack.c.bf16 %v306_v29, %v302_v28  ;;  %v292_v36 = vld [vmem:[%s848_s5 + $0x100] sm:$0xff]  ;;  %v293_v38 = vld [vmem:[%s848_s5 + $0x108] sm:$0xff] }
  0x2a   : > { %v347_v35 = vpack.c.bf16 %v307_v31, %v303_v30  ;;  %v296_v37 = vld [vmem:[%s848_s5 + $0x120] sm:$0xff]  ;;  %v297_v39 = vld [vmem:[%s848_s5 + $0x128] sm:$0xff]  ;;  %v294_v40 = vld [vmem:[%s848_s5 + $0x110] sm:$0xff] }
  0x2b   : > { %v298_v41 = vld [vmem:[%s848_s5 + $0x130] sm:$0xff]  ;;  %v295_v42 = vld [vmem:[%s848_s5 + $0x118] sm:$0xff]  ;;  %v340_v44 = vpack.c.bf16 %v296_v37, %v292_v36  ;;  %v341_v45 = vpack.c.bf16 %v297_v39, %v293_v38  ;;  %v284_v48 = vld [vmem:[%s848_s5 + $0xc0] sm:$0xff] }
  0x2c   : > { %v299_v43 = vld [vmem:[%s848_s5 + $0x138] sm:$0xff]  ;;  %v342_v46 = vpack.c.bf16 %v298_v41, %v294_v40  ;;  %v288_v49 = vld [vmem:[%s848_s5 + $0xe0] sm:$0xff]  ;;  %v285_v50 = vld [vmem:[%s848_s5 + $0xc8] sm:$0xff] }
  0x2d   : > { %357 = vmatpush.bf16.xpose.msra.mxu0 %v348_v20  ;;  %370 = vmatpush.bf16.xpose.msra.mxu1 %v349_v21  ;;  %v343_v47 = vpack.c.bf16 %v299_v43, %v295_v42  ;;  %v289_v51 = vld [vmem:[%s848_s5 + $0xe8] sm:$0xff]  ;;  %v286_v52 = vld [vmem:[%s848_s5 + $0xd0] sm:$0xff]  ;;  %v287_v54 = vld [vmem:[%s848_s5 + $0xd8] sm:$0xff]  ;;  %v336_v56 = vpack.c.bf16 %v288_v49, %v284_v48 }
  0x2e   : > { %383 = vmatpush.bf16.xpose.msra.mxu2 %v350_v22  ;;  %v290_v53 = vld [vmem:[%s848_s5 + $0xf0] sm:$0xff]  ;;  %v291_v55 = vld [vmem:[%s848_s5 + $0xf8] sm:$0xff]  ;;  %v337_v57 = vpack.c.bf16 %v289_v51, %v285_v50  ;;  %v276_v60 = vld [vmem:[%s848_s5 + $0x80] sm:$0xff] }
  0x2f   : > { %396 = vmatpush.bf16.xpose.msra.mxu3 %v351_v23  ;;  %v338_v58 = vpack.c.bf16 %v290_v53, %v286_v52  ;;  %v339_v59 = vpack.c.bf16 %v291_v55, %v287_v54  ;;  %v280_v61 = vld [vmem:[%s848_s5 + $0xa0] sm:$0xff]  ;;  %v277_v62 = vld [vmem:[%s848_s5 + $0x88] sm:$0xff]  ;;  %v278_v0 = vld [vmem:[%s848_s5 + $0x90] sm:$0xff] }
  0x30   : > { %v281_v63 = vld [vmem:[%s848_s5 + $0xa8] sm:$0xff]  ;;  %v282_v1 = vld [vmem:[%s848_s5 + $0xb0] sm:$0xff]  ;;  %v279_v2 = vld [vmem:[%s848_s5 + $0x98] sm:$0xff]  ;;  %v332_v4 = vpack.c.bf16 %v280_v61, %v276_v60 }
  0x31   : > { %v283_v3 = vld [vmem:[%s848_s5 + $0xb8] sm:$0xff]  ;;  %v333_v5 = vpack.c.bf16 %v281_v63, %v277_v62  ;;  %v334_v6 = vpack.c.bf16 %v282_v1, %v278_v0  ;;  %v268_v8 = vld [vmem:[%s848_s5 + $0x40] sm:$0xff]  ;;  %v269_v10 = vld [vmem:[%s848_s5 + $0x48] sm:$0xff] }
  0x32   : > { %v335_v7 = vpack.c.bf16 %v283_v3, %v279_v2  ;;  %v272_v9 = vld [vmem:[%s848_s5 + $0x60] sm:$0xff]  ;;  %v273_v11 = vld [vmem:[%s848_s5 + $0x68] sm:$0xff]  ;;  %v270_v12 = vld [vmem:[%s848_s5 + $0x50] sm:$0xff] }
  0x33   : > { %v274_v13 = vld [vmem:[%s848_s5 + $0x70] sm:$0xff]  ;;  %v271_v14 = vld [vmem:[%s848_s5 + $0x58] sm:$0xff]  ;;  %v328_v16 = vpack.c.bf16 %v272_v9, %v268_v8  ;;  %v329_v17 = vpack.c.bf16 %v273_v11, %v269_v10  ;;  %v260_v20 = vld [vmem:[%s848_s5] sm:$0xff] }
  0x34   : > { %v275_v15 = vld [vmem:[%s848_s5 + $0x78] sm:$0xff]  ;;  %v330_v18 = vpack.c.bf16 %v274_v13, %v270_v12  ;;  %v264_v21 = vld [vmem:[%s848_s5 + $0x20] sm:$0xff]  ;;  %v261_v22 = vld [vmem:[%s848_s5 + $0x8] sm:$0xff] }
  0x35   : > { %358 = vmatpush.bf16.xpose.msra.mxu0 %v344_v32  ;;  %371 = vmatpush.bf16.xpose.msra.mxu1 %v345_v33  ;;  %v331_v19 = vpack.c.bf16 %v275_v15, %v271_v14  ;;  %v265_v23 = vld [vmem:[%s848_s5 + $0x28] sm:$0xff]  ;;  %v262_v24 = vld [vmem:[%s848_s5 + $0x10] sm:$0xff]  ;;  %v263_v26 = vld [vmem:[%s848_s5 + $0x18] sm:$0xff]  ;;  %v324_v28 = vpack.c.bf16 %v264_v21, %v260_v20 }
  0x36   : > { %384 = vmatpush.bf16.xpose.msra.mxu2 %v346_v34  ;;  %v266_v25 = vld [vmem:[%s848_s5 + $0x30] sm:$0xff]  ;;  %v267_v27 = vld [vmem:[%s848_s5 + $0x38] sm:$0xff]  ;;  %v325_v29 = vpack.c.bf16 %v265_v23, %v261_v22  ;;  %v252_v32 = vld [vmem:[#allocation2] sm:$0xff] }
  0x37   : > { %397 = vmatpush.bf16.xpose.msra.mxu3 %v347_v35  ;;  %v326_v30 = vpack.c.bf16 %v266_v25, %v262_v24  ;;  %v327_v31 = vpack.c.bf16 %v267_v27, %v263_v26  ;;  %v253_v33 = vld [vmem:[#allocation2 + $0x8] sm:$0xff]  ;;  %v254_v34 = vld [vmem:[#allocation2 + $0x10] sm:$0xff]  ;;  %v255_v35 = vld [vmem:[#allocation2 + $0x18] sm:$0xff]  ;;  %v256_v36 = vpack.c.bf16 %v252_v32, %v252_v32 }
  0x38   : > { %v257_v37 = vpack.c.bf16 %v253_v33, %v253_v33  ;;  %v258_v38 = vpack.c.bf16 %v254_v34, %v254_v34  ;;  %v259_v39 = vpack.c.bf16 %v255_v35, %v255_v35  ;;  %v408_v42 = vld [vmem:[%s243_s26] sm:$0x1] }
  0x3d   : > { %359 = vmatpush.bf16.xpose.msra.mxu0 %v340_v44  ;;  %372 = vmatpush.bf16.xpose.msra.mxu1 %v341_v45  ;;  %v410_v44 = vmul.f32 0.70710677, %v408_v42 }
  0x3e   : > { %385 = vmatpush.bf16.xpose.msra.mxu2 %v342_v46 }
  0x3f   : > { %398 = vmatpush.bf16.xpose.msra.mxu3 %v343_v47  ;;  %v412_v51 = vperm.slane %v410_v44, 0 }
  0x45   : > { %360 = vmatpush.bf16.xpose.msra.mxu0 %v336_v56  ;;  %373 = vmatpush.bf16.xpose.msra.mxu1 %v337_v57 }
  0x46   : > { %386 = vmatpush.bf16.xpose.msra.mxu2 %v338_v58 }
  0x47   : > { %399 = vmatpush.bf16.xpose.msra.mxu3 %v339_v59 }
  0x4d   : > { %361 = vmatpush.bf16.xpose.msra.mxu0 %v332_v4  ;;  %374 = vmatpush.bf16.xpose.msra.mxu1 %v333_v5 }
  0x4e   : > { %387 = vmatpush.bf16.xpose.msra.mxu2 %v334_v6 }
  0x4f   : > { %400 = vmatpush.bf16.xpose.msra.mxu3 %v335_v7 }
  0x55   : > { %362 = vmatpush.bf16.xpose.msra.mxu0 %v328_v16  ;;  %375 = vmatpush.bf16.xpose.msra.mxu1 %v329_v17 }
  0x56   : > { %388 = vmatpush.bf16.xpose.msra.mxu2 %v330_v18 }
  0x57   : > { %401 = vmatpush.bf16.xpose.msra.mxu3 %v331_v19 }
  0x5d   : > { %363 = vmatpush.bf16.xpose.msra.mxu0 %v324_v28  ;;  %376 = vmatpush.bf16.xpose.msra.mxu1 %v325_v29 }
  0x5e   : > { %389 = vmatpush.bf16.xpose.msra.mxu2 %v326_v30 }
  0x5f   : > { %402 = vmatpush.bf16.xpose.msra.mxu3 %v327_v31 }
  0x64   : > { %364 = vmatmul.bf16.vlgmr.msra.gmra.mxu0 %v256_v36  ;;  %377 = vmatmul.bf16.vlgmr.msra.gmra.mxu1 %v257_v37 }
  0x65   : > { %390 = vmatmul.bf16.vlgmr.msra.gmra.mxu2 %v258_v38 }
  0x66   : > { %403 = vmatmul.bf16.vlgmr.msra.gmra.mxu3 %v259_v39 }
  0xe1   : > { %v365_v40 = vpop.f32.mrf.mxu0  ;;  %v378_v41 = vpop.f32.mrf.mxu1 }
  0xe2   : > { %v379_v43 = vadd.f32 %v378_v41, %v365_v40 }
  0xe8   : > { %v391_v45 = vpop.f32.mrf.mxu2 }
  0xe9   : > { %v392_v46 = vadd.f32 %v391_v45, %v379_v43  ;;  %v404_v47 = vpop.f32.mrf.mxu3  ;;  %v367_v48 = vpop.f32.mrf.mxu0 }
  0xea   : > { %v380_v49 = vpop.f32.mrf.mxu1 }
  0xeb   : > { %v405_v50 = vadd.f32 %v404_v47, %v392_v46 }
  0xed   : > { %v409_v52 = vmul.f32 0.03125, %v405_v50 }
  0xef   : > { %v414_v53 = vadd.f32 %v412_v51, %v409_v52 }
  0xf0   : > { %v393_v54 = vpop.f32.mrf.mxu2 }
  0xf1   : > { %vm415_vm0 = vcmp.ge.f32.partialorder %v414_v53, 0.0  ;;  %v416_v55 = vmul.f32 0.2, %v414_v53  ;;  %v406_v56 = vpop.f32.mrf.mxu3 }
  0xf3   : > { %v417_v57 = vsel %vm415_vm0, %v414_v53, %v416_v55 }
  0xf4   : > { %v418_v58 = vpack.c.bf16 %v417_v57, %v417_v57 }
  0xf6   : > { %419 = vst [vmem:[%s251_s7] sm:$0xf] %v418_v58 }
  0xf7 PF: > { %s17_s17 = sadd.s32 1, %s731_s17   ;;  %s953_s12 = smov %s715_s13 }
  0xf8   : > { %p14_p2 = scmp.ge.s32.totalorder %s17_s17, 4   ;;  %s954_s13 = smov %s719_s14 }
  0xf9   : > { %s955_s14 = smov %s837_s21  ;;  %s956_s15 = smov %s727_s16 }
  0xfa   : > { %s957_s16 = smov %s959_s30  ;;  %16 = sbr.rel (!%p14_p2) target bundleno = 5 (0x5), region = 81 }
  0xff   :  { %447 = vsyncpa [#allocation3], 1 }
 0x100   :  { %449 = vsyncpa [#allocation3 + $0x1], 1 }
 0x101   :  { %450 = vsyncpa [#allocation5], 1 }
 0x102   :  { %452 = vsyncpa [#allocation5 + $0x1], 1 }

</bundles_post_ra>
